<compile_context>
chip_gen: v7x
topology: tpu7x:2x2x1
jax: 0.10.0
libtpu: 0.0.40
codegen_flags: <defaults>
</compile_context>

<pallas_src>
import functools

import jax
import jax.numpy as jnp
from jax.experimental import pallas as pl
from jax.experimental.pallas import tpu as pltpu

H1, H2, H3 = 128, 256, 144   # hidden / output dims from the module definition
H3_PAD = 256                 # lane-dense padded fc3 width (2 * 128 lanes), MXU only


def _round_up(n, m):
    return ((n + m - 1) // m) * m


def _pick_bb(batch, block_b):
    """Rows per grid step (static, shape-derived Python).

    - small batches: one step covering the whole batch,
    - larger batches: an even number of steps >= 2 (so v7x's two TensorCores
      both get work via the "parallel" batch axis), each step <= block_b rows
      and a multiple of 8 (sublane-aligned).
    """
    if batch <= min(block_b, 512):
        return batch
    steps = max(2, pl.cdiv(batch, block_b))
    steps += steps % 2                      # even step count
    return _round_up(pl.cdiv(batch, steps), 8)


def _mlp_kernel(x_ref, w1_ref, b1_ref, w2_ref, b2_ref, w3_ref, b3_ref, o_ref):
    # MXU operands in bf16, accumulation + elementwise in f32.
    x = x_ref[...].astype(jnp.bfloat16)

    # fc1 + ReLU
    h1 = jnp.dot(x, w1_ref[...], preferred_element_type=jnp.float32) + b1_ref[...]
    h1 = jnp.maximum(h1, 0.0)

    # fc2 + ReLU
    h2 = jnp.dot(h1.astype(jnp.bfloat16), w2_ref[...],
                 preferred_element_type=jnp.float32) + b2_ref[...]
    h2 = jnp.maximum(h2, 0.0)

    # fc3 (weights padded to H3_PAD lanes for the MXU; padded cols are zero)
    z = jnp.dot(h2.astype(jnp.bfloat16), w3_ref[...],
                preferred_element_type=jnp.float32) + b3_ref[...]
    z = z[:, :H3]   # drop the MXU padding columns before softmax / store

    # log_softmax over the feature axis (PyTorch dim=1), all in f32.
    m = jnp.max(z, axis=-1, keepdims=True)
    s = z - m
    lse = jnp.log(jnp.sum(jnp.exp(s), axis=-1, keepdims=True))
    o_ref[...] = (s - lse).astype(o_ref.dtype)


def prepare_params(params):
    """One-time weight prep: bf16 MXU operands, fc3 padded to 256 lane-dense cols.

    Do this once (not per forward call) and reuse the result.
    """
    return dict(
        w1=params["w1"].astype(jnp.bfloat16),                               # (D,  H1)
        b1=params["b1"].astype(jnp.float32),                                # (1,  H1)
        w2=params["w2"].astype(jnp.bfloat16),                               # (H1, H2)
        b2=params["b2"].astype(jnp.float32),                                # (1,  H2)
        w3=jnp.pad(params["w3"], ((0, 0), (0, H3_PAD - H3))).astype(jnp.bfloat16),
        b3=jnp.pad(params["b3"], ((0, 0), (0, H3_PAD - H3))).astype(jnp.float32),
    )


@functools.partial(jax.jit, static_argnames=("block_b",))
def my_mlp_forward(x, prepared, *, block_b=2048):
    """x: (B, D) float32.  prepared: output of prepare_params()."""
    B, D = x.shape
    bb = _pick_bb(B, block_b)
    grid = (pl.cdiv(B, bb),)   # ragged last block if bb does not divide B

    out = pl.pallas_call(
        _mlp_kernel,
        out_shape=jax.ShapeDtypeStruct((B, H3), jnp.float32),
        grid_spec=pltpu.PrefetchScalarGridSpec(
            num_scalar_prefetch=0,
            grid=grid,
            in_specs=[
                pl.BlockSpec((bb, D), lambda i: (i, 0)),        # x tile
                pl.BlockSpec((D, H1), lambda i: (0, 0)),        # w1 (VMEM-resident)
                pl.BlockSpec((1, H1), lambda i: (0, 0)),        # b1
                pl.BlockSpec((H1, H2), lambda i: (0, 0)),       # w2
                pl.BlockSpec((1, H2), lambda i: (0, 0)),        # b2
                pl.BlockSpec((H2, H3_PAD), lambda i: (0, 0)),   # w3 (padded, MXU)
                pl.BlockSpec((1, H3_PAD), lambda i: (0, 0)),    # b3 (padded, zeros)
            ],
            # Store only the real 144 logit columns (no wrapper slice needed).
            out_specs=pl.BlockSpec((bb, H3), lambda i: (i, 0)),
        ),
        compiler_params=pltpu.CompilerParams(
            dimension_semantics=("parallel",),
        ),
    )(x, prepared["w1"], prepared["b1"], prepared["w2"], prepared["b2"],
      prepared["w3"], prepared["b3"])

    return out


def init_params(key, in_features):
    """Deterministic init mimicking nn.Linear default (uniform +-1/sqrt(fan_in))."""
    def linear(k, fan_in, fan_out):
        kw, kb = jax.random.split(k)
        bound = 1.0 / jnp.sqrt(fan_in)
        w = jax.random.uniform(kw, (fan_in, fan_out), jnp.float32, -bound, bound)
        b = jax.random.uniform(kb, (1, fan_out), jnp.float32, -bound, bound)
        return w, b

    k1, k2, k3 = jax.random.split(key, 3)
    w1, b1 = linear(k1, in_features, H1)
    w2, b2 = linear(k2, H1, H2)
    w3, b3 = linear(k3, H2, H3)
    return dict(w1=w1, b1=b1, w2=w2, b2=b2, w3=w3, b3=b3)


def reference_forward(x, params):
    """Pure-JAX f32 reference for correctness checking."""
    h1 = jnp.maximum(x @ params["w1"] + params["b1"], 0.0)
    h2 = jnp.maximum(h1 @ params["w2"] + params["b2"], 0.0)
    z = h2 @ params["w3"] + params["b3"]
    return jax.nn.log_softmax(z, axis=1)


if __name__ == "__main__":
    key = jax.random.PRNGKey(0)
    k_x, k_p, k_x2, k_x3 = jax.random.split(key, 4)

    B, D = 8, 32  # small demo batch; input feature dim = data.size()[-1]
    x = jax.random.normal(k_x, (B, D), dtype=jnp.float32)
    params = init_params(k_p, D)
    prepared = prepare_params(params)

    # 1) Single-tile path (small batch, one grid step).
    out = jax.block_until_ready(my_mlp_forward(x, prepared))
    ref = reference_forward(x, params)
    assert out.shape == (B, H3)
    # bf16 MXU operands => relaxed tolerance vs. the f32 reference.
    assert jnp.allclose(out, ref, atol=2e-2, rtol=2e-2), "mismatch vs reference"

    # 2) Multi-step grid with a ragged last block (B=20, tile 16 -> 2 steps,
    #    last step covers only 4 valid rows; no wrapper padding of x).
    B2 = 20
    x2 = jax.random.normal(k_x2, (B2, D), dtype=jnp.float32)
    out2 = jax.block_until_ready(my_mlp_forward(x2, prepared, block_b=16))
    ref2 = reference_forward(x2, params)
    assert out2.shape == (B2, H3)
    assert jnp.allclose(out2, ref2, atol=2e-2, rtol=2e-2), "mismatch (ragged grid)"

    # 3) B > 512 path: even grid (>=2 steps) so v7x can use both TensorCores.
    B3 = 520
    x3 = jax.random.normal(k_x3, (B3, D), dtype=jnp.float32)
    out3 = jax.block_until_ready(my_mlp_forward(x3, prepared))
    ref3 = reference_forward(x3, params)
    assert out3.shape == (B3, H3)
    assert jnp.allclose(out3, ref3, atol=2e-2, rtol=2e-2), "mismatch (split grid)"

    print("KERNEL_OK")
</pallas_src>

<mosaic_0001>
module attributes {stable_mosaic.version = 11 : i64} {
  func.func @_mlp_kernel(%arg0: i32, %arg1: memref<8x32xf32, #tpu.memory_space<vmem>>, %arg2: memref<32x128xbf16, #tpu.memory_space<vmem>>, %arg3: memref<1x128xf32, #tpu.memory_space<vmem>>, %arg4: memref<128x256xbf16, #tpu.memory_space<vmem>>, %arg5: memref<1x256xf32, #tpu.memory_space<vmem>>, %arg6: memref<256x256xbf16, #tpu.memory_space<vmem>>, %arg7: memref<1x256xf32, #tpu.memory_space<vmem>>, %arg8: memref<8x144xf32, #tpu.memory_space<vmem>>) attributes {dimension_semantics = [#tpu.dimension_semantics<parallel>], iteration_bounds = array<i64: 1>, scalar_prefetch = 0 : i64, scratch_operands = 0 : i64, tpu.core_type = #tpu.core_type<tc>, window_params = [{transform_indices = @transform_0, window_bounds = array<i64: 8, 32>}, {pipeline_mode = #tpu.pipeline_mode<synchronous>, transform_indices = @transform_1, window_bounds = array<i64: 32, 128>}, {pipeline_mode = #tpu.pipeline_mode<synchronous>, transform_indices = @transform_2, window_bounds = array<i64: 1, 128>}, {pipeline_mode = #tpu.pipeline_mode<synchronous>, transform_indices = @transform_3, window_bounds = array<i64: 128, 256>}, {pipeline_mode = #tpu.pipeline_mode<synchronous>, transform_indices = @transform_4, window_bounds = array<i64: 1, 256>}, {pipeline_mode = #tpu.pipeline_mode<synchronous>, transform_indices = @transform_5, window_bounds = array<i64: 256, 256>}, {pipeline_mode = #tpu.pipeline_mode<synchronous>, transform_indices = @transform_6, window_bounds = array<i64: 1, 256>}, {transform_indices = @transform_7, window_bounds = array<i64: 8, 144>}]} {
    %c0 = arith.constant 0 : index
    %c0_0 = arith.constant 0 : index
    %0 = vector.load %arg1[%c0, %c0_0] : memref<8x32xf32, #tpu.memory_space<vmem>>, vector<8x32xf32>
    %1 = arith.truncf %0 : vector<8x32xf32> to vector<8x32xbf16>
    %c0_1 = arith.constant 0 : index
    %c0_2 = arith.constant 0 : index
    %2 = vector.load %arg2[%c0_1, %c0_2] : memref<32x128xbf16, #tpu.memory_space<vmem>>, vector<32x128xbf16>
    %cst = arith.constant dense<0.000000e+00> : vector<8x128xf32>
    %3 = tpu.matmul %1, %2, %cst {dimension_numbers = #tpu.dot_dimension_numbers<[1], [0], [0], [1], [0, 0, 1, 1], [], []>} : vector<8x32xbf16>, vector<32x128xbf16>, vector<8x128xf32> -> vector<8x128xf32>
    %c0_3 = arith.constant 0 : index
    %c0_4 = arith.constant 0 : index
    %4 = vector.load %arg3[%c0_3, %c0_4] : memref<1x128xf32, #tpu.memory_space<vmem>>, vector<1x128xf32>
    %5 = vector.broadcast %4 : vector<1x128xf32> to vector<8x128xf32>
    %6 = arith.addf %3, %5 : vector<8x128xf32>
    %cst_5 = arith.constant 0.000000e+00 : f32
    %7 = vector.broadcast %cst_5 : f32 to vector<8x128xf32>
    %8 = arith.maximumf %6, %7 : vector<8x128xf32>
    %9 = arith.truncf %8 : vector<8x128xf32> to vector<8x128xbf16>
    %c0_6 = arith.constant 0 : index
    %c0_7 = arith.constant 0 : index
    %10 = vector.load %arg4[%c0_6, %c0_7] : memref<128x256xbf16, #tpu.memory_space<vmem>>, vector<128x256xbf16>
    %cst_8 = arith.constant dense<0.000000e+00> : vector<8x256xf32>
    %11 = tpu.matmul %9, %10, %cst_8 {dimension_numbers = #tpu.dot_dimension_numbers<[1], [0], [0], [1], [0, 0, 1, 1], [], []>} : vector<8x128xbf16>, vector<128x256xbf16>, vector<8x256xf32> -> vector<8x256xf32>
    %c0_9 = arith.constant 0 : index
    %c0_10 = arith.constant 0 : index
    %12 = vector.load %arg5[%c0_9, %c0_10] : memref<1x256xf32, #tpu.memory_space<vmem>>, vector<1x256xf32>
    %13 = vector.broadcast %12 : vector<1x256xf32> to vector<8x256xf32>
    %14 = arith.addf %11, %13 : vector<8x256xf32>
    %cst_11 = arith.constant 0.000000e+00 : f32
    %15 = vector.broadcast %cst_11 : f32 to vector<8x256xf32>
    %16 = arith.maximumf %14, %15 : vector<8x256xf32>
    %17 = arith.truncf %16 : vector<8x256xf32> to vector<8x256xbf16>
    %c0_12 = arith.constant 0 : index
    %c0_13 = arith.constant 0 : index
    %18 = vector.load %arg6[%c0_12, %c0_13] : memref<256x256xbf16, #tpu.memory_space<vmem>>, vector<256x256xbf16>
    %cst_14 = arith.constant dense<0.000000e+00> : vector<8x256xf32>
    %19 = tpu.matmul %17, %18, %cst_14 {dimension_numbers = #tpu.dot_dimension_numbers<[1], [0], [0], [1], [0, 0, 1, 1], [], []>} : vector<8x256xbf16>, vector<256x256xbf16>, vector<8x256xf32> -> vector<8x256xf32>
    %c0_15 = arith.constant 0 : index
    %c0_16 = arith.constant 0 : index
    %20 = vector.load %arg7[%c0_15, %c0_16] : memref<1x256xf32, #tpu.memory_space<vmem>>, vector<1x256xf32>
    %21 = vector.broadcast %20 : vector<1x256xf32> to vector<8x256xf32>
    %22 = arith.addf %19, %21 : vector<8x256xf32>
    %23 = vector.extract_strided_slice %22 {offsets = [0, 0], sizes = [8, 144], strides = [1, 1]} : vector<8x256xf32> to vector<8x144xf32>
    %cst_17 = arith.constant dense<0xFF800000> : vector<8xf32>
    %24 = vector.multi_reduction <maximumf>, %23, %cst_17 [1] : vector<8x144xf32> to vector<8xf32>
    %25 = vector.shape_cast %24 : vector<8xf32> to vector<8x1xf32>
    %26 = vector.broadcast %25 : vector<8x1xf32> to vector<8x144xf32>
    %27 = arith.subf %23, %26 : vector<8x144xf32>
    %28 = math.exp %27 : vector<8x144xf32>
    %cst_18 = arith.constant dense<0.000000e+00> : vector<8xf32>
    %29 = vector.multi_reduction <add>, %28, %cst_18 [1] : vector<8x144xf32> to vector<8xf32>
    %30 = vector.shape_cast %29 : vector<8xf32> to vector<8x1xf32>
    %31 = math.log %30 : vector<8x1xf32>
    %32 = vector.broadcast %31 : vector<8x1xf32> to vector<8x144xf32>
    %33 = arith.subf %27, %32 : vector<8x144xf32>
    %c0_19 = arith.constant 0 : index
    %c0_20 = arith.constant 0 : index
    %34 = vector.load %arg8[%c0_19, %c0_20] : memref<8x144xf32, #tpu.memory_space<vmem>>, vector<8x144xf32>
    tpu.vector_store %arg8[%c0_19, %c0_20], %33 {strides = array<i32>} : memref<8x144xf32, #tpu.memory_space<vmem>>, vector<8x144xf32>,
    return
  }
  func.func @transform_0(%arg0: i32) -> (i32, i32) {
    %c0_i32 = arith.constant 0 : i32
    %c0_i32_0 = arith.constant 0 : i32
    return %arg0, %c0_i32 : i32, i32
  }
  func.func @transform_1(%arg0: i32) -> (i32, i32) {
    %c0_i32 = arith.constant 0 : i32
    %c0_i32_0 = arith.constant 0 : i32
    %c0_i32_1 = arith.constant 0 : i32
    return %c0_i32, %c0_i32_0 : i32, i32
  }
  func.func @transform_2(%arg0: i32) -> (i32, i32) {
    %c0_i32 = arith.constant 0 : i32
    %c0_i32_0 = arith.constant 0 : i32
    %c0_i32_1 = arith.constant 0 : i32
    return %c0_i32, %c0_i32_0 : i32, i32
  }
  func.func @transform_3(%arg0: i32) -> (i32, i32) {
    %c0_i32 = arith.constant 0 : i32
    %c0_i32_0 = arith.constant 0 : i32
    %c0_i32_1 = arith.constant 0 : i32
    return %c0_i32, %c0_i32_0 : i32, i32
  }
  func.func @transform_4(%arg0: i32) -> (i32, i32) {
    %c0_i32 = arith.constant 0 : i32
    %c0_i32_0 = arith.constant 0 : i32
    %c0_i32_1 = arith.constant 0 : i32
    return %c0_i32, %c0_i32_0 : i32, i32
  }
  func.func @transform_5(%arg0: i32) -> (i32, i32) {
    %c0_i32 = arith.constant 0 : i32
    %c0_i32_0 = arith.constant 0 : i32
    %c0_i32_1 = arith.constant 0 : i32
    return %c0_i32, %c0_i32_0 : i32, i32
  }
  func.func @transform_6(%arg0: i32) -> (i32, i32) {
    %c0_i32 = arith.constant 0 : i32
    %c0_i32_0 = arith.constant 0 : i32
    %c0_i32_1 = arith.constant 0 : i32
    return %c0_i32, %c0_i32_0 : i32, i32
  }
  func.func @transform_7(%arg0: i32) -> (i32, i32) {
    %c0_i32 = arith.constant 0 : i32
    %c0_i32_0 = arith.constant 0 : i32
    return %arg0, %c0_i32 : i32, i32
  }
}

</mosaic_0001>

<bundles_post_ra>
// kernel: my_mlp_forward.1
= control target key start
LH: loop header
LB: loop body
LE: loop exit
PB: predicated region body
PF: predicated region fallthrough
CT: control target
= control target key end

     0   :  { %12 = vsyncpa [#allocation3], 0  ;;  %s985_s0 = inlined_call_operand.hbm [shape: f32[8,32], index: 0, kind: input, shape index: {}]   ;;  %s986_s1 = inlined_call_operand.hbm [shape: bf16[32,128], index: 1, kind: input, shape index: {}]   ;;  %s987_s2 = inlined_call_operand.vmem [shape: f32[1,128], index: 2, kind: input, shape index: {}]   ;;  %s988_s3 = inlined_call_operand.hbm [shape: bf16[128,256], index: 3, kind: input, shape index: {}]   ;;  %s989_s4 = inlined_call_operand.vmem [shape: f32[1,256], index: 4, kind: input, shape index: {}]   ;;  %s990_s5 = inlined_call_operand.hbm [shape: bf16[256,256], index: 5, kind: input, shape index: {}]   ;;  %s991_s6 = inlined_call_operand.vmem [shape: f32[1,256], index: 6, kind: input, shape index: {}]   ;;  %s992_s7 = inlined_call_operand.hbm [shape: f32[8,144], index: 7, kind: output, shape index: {}]  }
   0x1   :  { %13 = vsyncpa [#allocation6], 0 }
   0x2   :  { %14 = vsyncpa [#allocation9], 0 }
   0x3   :  { %15 = vsyncpa [#allocation4], 0  ;;  %s861_s24 = smov [#allocation5]   ;;  %s743_s28 = scalar_lea.hbm %s986_s1, 256 }
   0x4   :  { %s31_s25 = sshll.u32 %s861_s24, 4  ;;  %p744_p0 = scmp.ne.s32.totalorder %s986_s1, %s743_s28  ;;  %s32_s25 = int_to_ptr.vmem [resolvable:$true] %s31_s25 }
   0x5   :  { %p747_p1 = scmp.lt.u32.totalorder %s743_s28, %s986_s1 }
   0x7   :  { %p749_p2 = pnand %p747_p1, %p744_p0 }
   0x9   :  { %752 = shalt.err (!%p749_p2)
}
   0xa   :  { %s753_s10 = scalar_lea.vmem %s32_s25, 256  ;;  %p758_p4 = scmp.lt.s32.totalorder %s32_s25, %s32_s25 }
   0xb   :  { %p754_p3 = scmp.ne.s32.totalorder %s32_s25, %s753_s10  ;;  %p759_p5 = scmp.lt.s32.totalorder %s753_s10, %s753_s10 }
   0xd   :  { %p760_p6 = por %p759_p5, %p758_p4 }
   0xf   :  { %p761_p7 = pnand %p760_p6, %p754_p3 }
  0x11   :  { %764 = shalt.err (!%p761_p7)
}
  0x12   :  { %s862_s11 = smov 64   ;;  %s863_s12 = smov 4  }
  0x13   :  { %37 = dma.hbm_to_vmem [thread:$0]  %s986_s1, 256, %s32_s25, [#allocation6], %s862_s11, %s862_s11, %s863_s12  }
  0x14   :  { %s864_s15 = smov [#allocation2]   ;;  %s865_s17 = smov [#allocation7]  }
  0x15   :  { %s22_s16 = sshll.u32 %s864_s15, 4  ;;  %s45_s18 = sshll.u32 %s865_s17, 4  ;;  %s23_s16 = int_to_ptr.vmem [resolvable:$true] %s22_s16  ;;  %s46_s18 = int_to_ptr.vmem [resolvable:$true] %s45_s18 }
  0x16   :  { %s765_s21 = scalar_lea.hbm %s985_s0, 128 }
  0x17   :  { %p766_p8 = scmp.ne.s32.totalorder %s985_s0, %s765_s21  ;;  %p769_p9 = scmp.lt.u32.totalorder %s765_s21, %s985_s0 }
  0x19   :  { %p771_p10 = pnand %p769_p9, %p766_p8 }
  0x1b   :  { %774 = shalt.err (!%p771_p10)
}
  0x1c   :  { %s775_s1 = scalar_lea.vmem %s23_s16, 128  ;;  %p780_p12 = scmp.lt.s32.totalorder %s23_s16, %s23_s16 }
  0x1d   :  { %p776_p11 = scmp.ne.s32.totalorder %s23_s16, %s775_s1  ;;  %p781_p13 = scmp.lt.s32.totalorder %s775_s1, %s775_s1 }
  0x1f   :  { %p782_p0 = por %p781_p13, %p780_p12 }
  0x21   :  { %p783_p1 = pnand %p782_p0, %p776_p11 }
  0x23   :  { %786 = shalt.err (!%p783_p1)
}
  0x24   :  { %25 = dma.hbm_to_vmem [thread:$0]  %s985_s0, 128, %s23_s16, [#allocation3]  }
  0x25   :  { %s787_s30 = scalar_lea.hbm %s988_s3, 2048 }
  0x26   :  { %p788_p2 = scmp.ne.s32.totalorder %s988_s3, %s787_s30  ;;  %p791_p3 = scmp.lt.u32.totalorder %s787_s30, %s988_s3 }
  0x28   :  { %p793_p4 = pnand %p791_p3, %p788_p2 }
  0x2a   :  { %796 = shalt.err (!%p793_p4)
}
  0x2b   :  { %s797_s12 = scalar_lea.vmem %s46_s18, 2048  ;;  %p802_p6 = scmp.lt.s32.totalorder %s46_s18, %s46_s18 }
  0x2c   :  { %p798_p5 = scmp.ne.s32.totalorder %s46_s18, %s797_s12  ;;  %p803_p7 = scmp.lt.s32.totalorder %s797_s12, %s797_s12 }
  0x2e   :  { %p804_p8 = por %p803_p7, %p802_p6 }
  0x30   :  { %p805_p9 = pnand %p804_p8, %p798_p5 }
  0x32   :  { %808 = shalt.err (!%p805_p9)
}
  0x33   :  { %s866_s0 = smov 128   ;;  %s867_s13 = smov 8  }
  0x34   :  { %51 = dma.hbm_to_vmem [thread:$0]  %s988_s3, 2048, %s46_s18, [#allocation6], %s866_s0, %s866_s0, %s867_s13  }
  0x35   :  { %s868_s16 = smov [#allocation8]   ;;  %s809_s21 = scalar_lea.hbm %s990_s5, 4096 }
  0x36   :  { %s59_s17 = sshll.u32 %s868_s16, 4  ;;  %p810_p10 = scmp.ne.s32.totalorder %s990_s5, %s809_s21  ;;  %s60_s17 = int_to_ptr.vmem [resolvable:$true] %s59_s17 }
  0x37   :  { %p813_p11 = scmp.lt.u32.totalorder %s809_s21, %s990_s5 }
  0x39   :  { %p815_p12 = pnand %p813_p11, %p810_p10 }
  0x3b   :  { %818 = shalt.err (!%p815_p12)
}
  0x3c   :  { %s819_s1 = scalar_lea.vmem %s60_s17, 4096  ;;  %p824_p0 = scmp.lt.s32.totalorder %s60_s17, %s60_s17 }
  0x3d   :  { %p820_p13 = scmp.ne.s32.totalorder %s60_s17, %s819_s1  ;;  %p825_p1 = scmp.lt.s32.totalorder %s819_s1, %s819_s1 }
  0x3f   :  { %p826_p2 = por %p825_p1, %p824_p0 }
  0x41   :  { %p827_p3 = pnand %p826_p2, %p820_p13 }
  0x43   :  { %830 = shalt.err (!%p827_p3)
}
  0x44   :  { %65 = dma.hbm_to_vmem [thread:$0]  %s990_s5, 4096, %s60_s17, [#allocation9], %s866_s0, %s866_s0, %s867_s13  }
  0x45   :  { %853 = dma.done.wait [#allocation3], 128  }
  0x46   :  { %854 = vsyncadd [#allocation3], 4294967168 }
  0x47   :  { %855 = dma.done.wait [#allocation6], 2304  }
  0x48   :  { %856 = vsyncadd [#allocation6], 4294964992 }
  0x49   :  { %857 = dma.done.wait [#allocation9], 4096  }
  0x4a   :  { %858 = vsyncadd [#allocation9], 4294963200  ;;  %v869_v0 = vmov 0.0   ;;  %vm870_vm0 = vmmov 0   ;;  %v663_v1 = vld [vmem:[#allocation5] sm:$0xff]   ;;  %v664_v2 = vld [vmem:[#allocation5 + $0x8] sm:$0xff]   ;;  %v170_v62 = vlaneseq }
  0x4b   :  { %643 = vmatprep.subr.bf16.mxu1 %v869_v0  ;;  %647 = vmatprep.mubr.msk.bf16.mxu1 %vm870_vm0, %v869_v0  ;;  %v81_v3 = vld [vmem:[#allocation2] sm:$0xff]  ;;  %vm106_vm1 = vcmask 261120   ;;  %v670_v7 = vld [vmem:[#allocation7 + $0x14] ss:$8 sps:$4 sm:$0xff]   ;;  %v668_v8 = vld [vmem:[#allocation7 + $0x10] ss:$8 sps:$4 sm:$0xff]  }
  0x4c   :  { %644 = vmatpush3.bf16.msra.mxu1 %v663_v1  ;;  %v667_v4 = vld [vmem:[#allocation7 + $0x4] ss:$8 sps:$4 sm:$0xff]   ;;  %v82_v5 = vpack.c.bf16 %v81_v3, %v81_v3  ;;  %v665_v6 = vld [vmem:[#allocation7] ss:$8 sps:$4 sm:$0xff]   ;;  %v676_v11 = vld [vmem:[#allocation7 + $0x34] ss:$8 sps:$4 sm:$0xff]  }
  0x4d   :  { %645 = vmatprep.subr.bf16.mxu1 %v869_v0  ;;  %v673_v9 = vld [vmem:[#allocation7 + $0x24] ss:$8 sps:$4 sm:$0xff]   ;;  %v671_v10 = vld [vmem:[#allocation7 + $0x20] ss:$8 sps:$4 sm:$0xff]   ;;  %v674_v12 = vld [vmem:[#allocation7 + $0x30] ss:$8 sps:$4 sm:$0xff]  }
  0x4e   :  { %v679_v13 = vld [vmem:[#allocation7 + $0x44] ss:$8 sps:$4 sm:$0xff]   ;;  %v677_v14 = vld [vmem:[#allocation7 + $0x40] ss:$8 sps:$4 sm:$0xff]   ;;  %v682_v15 = vld [vmem:[#allocation7 + $0x54] ss:$8 sps:$4 sm:$0xff]  }
  0x4f   :  { %v680_v16 = vld [vmem:[#allocation7 + $0x50] ss:$8 sps:$4 sm:$0xff]   ;;  %v685_v17 = vld [vmem:[#allocation7 + $0x64] ss:$8 sps:$4 sm:$0xff]   ;;  %v683_v18 = vld [vmem:[#allocation7 + $0x60] ss:$8 sps:$4 sm:$0xff]  }
  0x50   :  { %646 = vmatpush3.bf16.msra.mxu1 %v664_v2  ;;  %v688_v19 = vld [vmem:[#allocation7 + $0x74] ss:$8 sps:$4 sm:$0xff]   ;;  %v686_v20 = vld [vmem:[#allocation7 + $0x70] ss:$8 sps:$4 sm:$0xff]   ;;  %v871_v21 = vmov 0   ;;  %v171_v63 = vshrl.u32 %v170_v62, 7 }
  0x51   :  { %260 = vmatprep.subr.bf16.mxu1 %v667_v4  ;;  %v689_v22 = vld [vmem:[#allocation8 + $0x4] ss:$8 sps:$4 sm:$0xff]   ;;  %v691_v23 = vld [vmem:[#allocation8] ss:$8 sps:$4 sm:$0xff]   ;;  %v692_v24 = vld [vmem:[#allocation8 + $0x14] ss:$8 sps:$4 sm:$0xff]  }
  0x52   :  { %509 = vmatprep.subr.bf16.mxu0 %v689_v22  ;;  %v694_v25 = vld [vmem:[#allocation8 + $0x10] ss:$8 sps:$4 sm:$0xff]   ;;  %v695_v26 = vld [vmem:[#allocation8 + $0x24] ss:$8 sps:$4 sm:$0xff]   ;;  %v697_v27 = vld [vmem:[#allocation8 + $0x20] ss:$8 sps:$4 sm:$0xff]  }
  0x53   :  { %648 = vmatmul.mubr.msk.bf16.vlgmr.msra.gmra.mrb[0].mxu1 %vm106_vm1, %v82_v5  ;;  %510 = vmatpush1.bf16.msra.mxu0 %v691_v23  ;;  %v698_v28 = vld [vmem:[#allocation8 + $0x34] ss:$8 sps:$4 sm:$0xff]   ;;  %v700_v29 = vld [vmem:[#allocation8 + $0x30] ss:$8 sps:$4 sm:$0xff]   ;;  %v701_v30 = vld [vmem:[#allocation8 + $0x44] ss:$8 sps:$4 sm:$0xff]  }
  0x54   :  { %261 = vmatpush1.bf16.msra.mxu1 %v665_v6  ;;  %292 = vmatprep.mubr.bf16.mxu1 %v871_v21  ;;  %v703_v31 = vld [vmem:[#allocation8 + $0x40] ss:$8 sps:$4 sm:$0xff]   ;;  %v704_v32 = vld [vmem:[#allocation8 + $0x54] ss:$8 sps:$4 sm:$0xff]   ;;  %v706_v33 = vld [vmem:[#allocation8 + $0x50] ss:$8 sps:$4 sm:$0xff]  }
  0x55   :  { %262 = vmatprep.subr.bf16.mxu1 %v670_v7  ;;  %511 = vmatprep.subr.bf16.mxu0 %v692_v24  ;;  %v707_v34 = vld [vmem:[#allocation8 + $0x64] ss:$8 sps:$4 sm:$0xff]   ;;  %v709_v35 = vld [vmem:[#allocation8 + $0x60] ss:$8 sps:$4 sm:$0xff]   ;;  %v710_v36 = vld [vmem:[#allocation8 + $0x74] ss:$8 sps:$4 sm:$0xff]  }
  0x56   :  { %v712_v37 = vld [vmem:[#allocation8 + $0x70] ss:$8 sps:$4 sm:$0xff]   ;;  %v713_v38 = vld [vmem:[#allocation8 + $0x84] ss:$8 sps:$4 sm:$0xff]   ;;  %v715_v39 = vld [vmem:[#allocation8 + $0x80] ss:$8 sps:$4 sm:$0xff]  }
  0x57   :  { %512 = vmatpush1.bf16.msra.mxu0 %v694_v25  ;;  %v716_v40 = vld [vmem:[#allocation8 + $0x94] ss:$8 sps:$4 sm:$0xff]   ;;  %v718_v41 = vld [vmem:[#allocation8 + $0x90] ss:$8 sps:$4 sm:$0xff]   ;;  %v719_v42 = vld [vmem:[#allocation8 + $0xa4] ss:$8 sps:$4 sm:$0xff]  }
  0x58   :  { %263 = vmatpush1.bf16.msra.mxu1 %v668_v8  ;;  %513 = vmatprep.subr.bf16.mxu0 %v695_v26  ;;  %v721_v43 = vld [vmem:[#allocation8 + $0xa0] ss:$8 sps:$4 sm:$0xff]   ;;  %v722_v44 = vld [vmem:[#allocation8 + $0xb4] ss:$8 sps:$4 sm:$0xff]   ;;  %v724_v45 = vld [vmem:[#allocation8 + $0xb0] ss:$8 sps:$4 sm:$0xff]  }
  0x59   :  { %264 = vmatprep.subr.bf16.mxu1 %v673_v9  ;;  %v725_v46 = vld [vmem:[#allocation8 + $0xc4] ss:$8 sps:$4 sm:$0xff]   ;;  %v727_v47 = vld [vmem:[#allocation8 + $0xc0] ss:$8 sps:$4 sm:$0xff]   ;;  %v728_v48 = vld [vmem:[#allocation8 + $0xd4] ss:$8 sps:$4 sm:$0xff]  }
  0x5a   :  { %v730_v49 = vld [vmem:[#allocation8 + $0xd0] ss:$8 sps:$4 sm:$0xff]   ;;  %v588_v50 = vld [vmem:[%s987_s2] ss:$0 sm:$0xff]  ;;  %v731_v58 = vld [vmem:[#allocation8 + $0xe4] ss:$8 sps:$4 sm:$0xff]  }
  0x5b   :  { %514 = vmatpush1.bf16.msra.mxu0 %v697_v27  ;;  %v733_v59 = vld [vmem:[#allocation8 + $0xe0] ss:$8 sps:$4 sm:$0xff]   ;;  %v734_v60 = vld [vmem:[#allocation8 + $0xf4] ss:$8 sps:$4 sm:$0xff]   ;;  %v736_v61 = vld [vmem:[#allocation8 + $0xf0] ss:$8 sps:$4 sm:$0xff]  }
  0x5c   :  { %265 = vmatpush1.bf16.msra.mxu1 %v671_v10  ;;  %515 = vmatprep.subr.bf16.mxu0 %v698_v28  ;;  %v172_v0 = vsub.s32 0, %v171_v63  ;;  %v168_v1 = vld [vmem:[%s989_s4] sm:$0x3]  ;;  %v176_v2 = vsub.s32 1, %v171_v63  ;;  %vm550_vm2 = vcmask 130048   ;;  %s872_s4 = smov [#allocation10]  }
  0x5d   :  { %266 = vmatprep.subr.bf16.mxu1 %v676_v11 }
  0x5e   :  { %v173_v3 = vrot.slane %v168_v1, %v172_v0  ;;  %v177_v4 = vrot.slane %v168_v1, %v176_v2 }
  0x5f   :  { %516 = vmatpush1.bf16.msra.mxu0 %v700_v29 }
  0x60   :  { %267 = vmatpush1.bf16.msra.mxu1 %v674_v12  ;;  %517 = vmatprep.subr.bf16.mxu0 %v701_v30 }
  0x61   :  { %268 = vmatprep.subr.bf16.mxu1 %v679_v13 }
  0x63   :  { %518 = vmatpush1.bf16.msra.mxu0 %v703_v31 }
  0x64   :  { %269 = vmatpush1.bf16.msra.mxu1 %v677_v14  ;;  %519 = vmatprep.subr.bf16.mxu0 %v704_v32 }
  0x65   :  { %270 = vmatprep.subr.bf16.mxu1 %v682_v15  ;;  %v337_v15 = vld [vmem:[%s991_s6] sm:$0x3]  ;;  %s577_s6 = sshll.u32 %s872_s4, 4  ;;  %s578_s6 = int_to_ptr.vmem [resolvable:$true] %s577_s6 }
  0x66   :  { %s831_s30 = scalar_lea.vmem %s578_s6, 256  ;;  %p836_p5 = scmp.lt.s32.totalorder %s578_s6, %s578_s6 }
  0x67   :  { %520 = vmatpush1.bf16.msra.mxu0 %v706_v33  ;;  %p832_p4 = scmp.ne.s32.totalorder %s578_s6, %s831_s30  ;;  %p837_p6 = scmp.lt.s32.totalorder %s831_s30, %s831_s30 }
  0x68   :  { %271 = vmatpush1.bf16.msra.mxu1 %v680_v16  ;;  %521 = vmatprep.subr.bf16.mxu0 %v707_v34  ;;  %v346_v16 = vrot.slane %v337_v15, %v176_v2 }
  0x69   :  { %272 = vmatprep.subr.bf16.mxu1 %v685_v17  ;;  %v342_v17 = vrot.slane %v337_v15, %v172_v0  ;;  %p838_p7 = por %p837_p6, %p836_p5 }
  0x6b   :  { %522 = vmatpush1.bf16.msra.mxu0 %v709_v35  ;;  %p839_p8 = pnand %p838_p7, %p832_p4 }
  0x6c   :  { %273 = vmatpush1.bf16.msra.mxu1 %v683_v18  ;;  %523 = vmatprep.subr.bf16.mxu0 %v710_v36 }
  0x6d   :  { %274 = vmatprep.subr.bf16.mxu1 %v688_v19 }
  0x6f   :  { %524 = vmatpush1.bf16.msra.mxu0 %v712_v37 }
  0x70   :  { %275 = vmatpush1.bf16.msra.mxu1 %v686_v20  ;;  %525 = vmatprep.subr.bf16.mxu0 %v713_v38 }
  0x73   :  { %526 = vmatpush1.bf16.msra.mxu0 %v715_v39 }
  0x74   :  { %527 = vmatprep.subr.bf16.mxu0 %v716_v40 }
  0x77   :  { %528 = vmatpush1.bf16.msra.mxu0 %v718_v41 }
  0x78   :  { %529 = vmatprep.subr.bf16.mxu0 %v719_v42 }
  0x7b   :  { %530 = vmatpush1.bf16.msra.mxu0 %v721_v43 }
  0x7c   :  { %531 = vmatprep.subr.bf16.mxu0 %v722_v44 }
  0x7f   :  { %532 = vmatpush1.bf16.msra.mxu0 %v724_v45 }
  0x80   :  { %533 = vmatprep.subr.bf16.mxu0 %v725_v46 }
  0x83   :  { %534 = vmatpush1.bf16.msra.mxu0 %v727_v47 }
  0x84   :  { %535 = vmatprep.subr.bf16.mxu0 %v728_v48 }
  0x87   :  { %536 = vmatpush1.bf16.msra.mxu0 %v730_v49 }
  0x88   :  { %537 = vmatprep.subr.bf16.mxu0 %v731_v58 }
  0x8b   :  { %538 = vmatpush1.bf16.msra.mxu0 %v733_v59 }
  0x8c   :  { %539 = vmatprep.subr.bf16.mxu0 %v734_v60 }
  0x8f   :  { %540 = vmatpush1.bf16.msra.mxu0 %v736_v61 }
 0x126   :  { %v144_v51 = vpop.f32.mrb[0].mxu1 }
 0x127   :  { %v145_v52 = vadd.f32 %v588_v50, %v144_v51  ;;  %v649_v53 = vpop.f32.mrb[1].mxu1 }
 0x128   :  { %v147_v54 = vpop.f32.mrb[2].mxu1 }
 0x129   :  { %v150_v55 = vmax.f32 %v145_v52, 0.0  ;;  %v650_v56 = vpop.f32.mrb[3].mxu1 }
 0x12b   :  { %v151_v57 = vpack.c.bf16 %v150_v55, %v150_v55 }
 0x12d   :  { %293 = vmatmul.mubr.bf16.vlgmr.msra.gmra.mrb[4].mxu1 %v151_v57 }
 0x200   :  { %v294_v5 = vpop.f32.mrb[4].mxu1 }
 0x201   :  { %v295_v6 = vadd.f32 %v294_v5, %v173_v3  ;;  %v296_v7 = vpop.f32.mrb[5].mxu1 }
 0x202   :  { %v297_v8 = vadd.f32 %v296_v7, %v177_v4  ;;  %v298_v9 = vpop.f32.mrb[6].mxu1 }
 0x203   :  { %v301_v10 = vmax.f32 %v295_v6, 0.0  ;;  %v299_v11 = vpop.f32.mrb[7].mxu1 }
 0x204   :  { %v302_v12 = vmax.f32 %v297_v8, 0.0 }
 0x205   :  { %v303_v14 = vpack.c.bf16 %v301_v10, %v301_v10 }
 0x206   :  { %v304_v13 = vpack.c.bf16 %v302_v12, %v302_v12 }
 0x208   :  { %541 = vmatprep.mubr.bf16.mxu0 %v304_v13 }
 0x209   :  { %542 = vmatmul.mubr.bf16.vlgmr.msra.gmra.mrb[0].mxu0 %v303_v14 }
 0x2dc   :  { %v543_v18 = vpop.f32.mrb[0].mxu0 }
 0x2dd   :  { %v545_v19 = vpop.f32.mrb[1].mxu0  ;;  %v544_v22 = vadd.f32 %v543_v18, %v342_v17 }
 0x2de   :  { %v546_v20 = vadd.f32 %v545_v19, %v346_v16  ;;  %v547_v21 = vpop.f32.mrb[2].mxu0 }
 0x2df   :  { %v548_v23 = vpop.f32.mrb[3].mxu0 }
 0x2e0   :  { %v551_v24 = vsel %vm550_vm2, %v546_v20, -inf }
 0x2e1   :  { %v552_v25 = vmax.f32 %v544_v22, %v551_v24 }
 0x2e3   :  { %553 = vmax.xlane.f32.xlu0 %v552_v25 }
 0x370   :  { %v554_v26 = vpop.xlane.xlu0 %553 }
 0x371   :  { %v555_v27 = vsub.f32 %v544_v22, %v554_v26  ;;  %v556_v28 = vsub.f32 %v546_v20, %v554_v26 }
 0x373   :  { %v557_v29 = vmul.f32 1.442695, %v555_v27  ;;  %v559_v30 = vmul.f32 1.442695, %v556_v28 }
 0x375   :  { %737 = vpow2.f32 %v557_v29 }
 0x376   :  { %739 = vpow2.f32 %v559_v30 }
 0x37f   :  { %v738_v31 = vpop.eup %737 }
 0x380   :  { %v740_v32 = vpop.eup %739 }
 0x381   :  { %v561_v33 = vsel %vm550_vm2, %v740_v32, 0.0 }
 0x382   :  { %v562_v34 = vadd.f32 %v738_v31, %v561_v33 }
 0x384   :  { %563 = vadd.xlane.f32.xlu0 %v562_v34 }
 0x411   :  { %v564_v35 = vpop.xlane.xlu0 %563 }
 0x412   :  { %741 = vlog2.f32 %v564_v35 }
 0x41c   :  { %v742_v36 = vpop.eup %741 }
 0x41d   :  { %v566_v37 = vmul.f32 0.6931472, %v742_v36 }
 0x41f   :  { %v567_v38 = vsub.f32 %v555_v27, %v566_v37  ;;  %v568_v39 = vsub.f32 %v556_v28, %v566_v37 }
 0x421   :  { %569 = vst [vmem:[#allocation10] sm:$0xff] %v567_v38  ;;  %570 = vst.msk [vmem:[#allocation10 + $0x8] sm:$0xff] %vm550_vm2, %v568_v39 }
 0x422   :  { %842 = shalt.err (!%p839_p8)
}
 0x423   :  { %s843_s10 = scalar_lea.hbm %s992_s7, 256 }
 0x424   :  { %p844_p9 = scmp.ne.s32.totalorder %s992_s7, %s843_s10  ;;  %p847_p10 = scmp.lt.u32.totalorder %s843_s10, %s992_s7 }
 0x426   :  { %p849_p11 = pnand %p847_p10, %p844_p9 }
 0x428   :  { %852 = shalt.err (!%p849_p11)
}
 0x429   :  { %580 = dma.vmem_to_hbm [thread:$0]  %s578_s6, 256, %s992_s7, [#allocation4]  }
 0x42a   :  { %859 = dma.done.wait [#allocation4], 256  }
 0x42b   :  { %860 = vsyncadd [#allocation4], 4294967040 }
 0x42c   :  { %584 = vsyncpa [#allocation3], 1 }
 0x42d   :  { %585 = vsyncpa [#allocation6], 1 }
 0x42e   :  { %586 = vsyncpa [#allocation9], 1 }
 0x42f   :  { %587 = vsyncpa [#allocation4], 1 }

</bundles_post_ra>
